<compile_context>
chip_gen: v7x
topology: tpu7x:2x2x1
jax: 0.10.0
libtpu: 0.0.40
codegen_flags: <defaults>
</compile_context>

<pallas_src>
import functools

import jax
import jax.numpy as jnp
from jax.experimental import pallas as pl
from jax.experimental.pallas import tpu as pltpu

ALPHA = 0.15
GAMMA = 2
LANE = 128
SUBLANE_ALIGN = 32      # row-block granularity safe for f32 / bf16 / int8 tiling
MAX_BLOCK_ROWS = 1024   # 1024 x 128 x 4B = 512 KiB per f32 block
NUM_CORES = 2           # leading "parallel" grid axis (uses both TCs on v7x)


def _round_up(x, m):
    return ((x + m - 1) // m) * m


def _focal_loss_kernel(x_ref, t_ref, o_ref, acc_ref, *, alpha, gamma):
    i = pl.program_id(1)

    @pl.when(i == 0)
    def _init():
        acc_ref[...] = jnp.zeros_like(acc_ref)

    x = x_ref[...].astype(jnp.float32)
    t = t_ref[...].astype(jnp.float32)

    # Numerically stable BCE-with-logits:
    #   bce = max(x, 0) - x*t + log1p(exp(-|x|))
    e = jnp.exp(-jnp.abs(x))            # single exp; reused for pt below
    bce = jnp.maximum(x, 0.0) - x * t + jnp.log1p(e)

    # pt = exp(-bce).  For binary (0/1) targets this factors algebraically as
    #   pt = (1 if sign(t - 0.5) == sign(x) else e) / (1 + e)
    # which avoids a second exp per element (exact division kept for accuracy;
    # the EUP saving comes from dropping the exp).
    same_side = jnp.logical_xor(t >= 0.5, x < 0.0)
    pt = jnp.where(same_side, jnp.float32(1.0), e) / (1.0 + e)

    # at = alpha_table[target] with alpha_table = [alpha, 1 - alpha]
    at = jnp.where(t >= 0.5, jnp.float32(1.0 - alpha), jnp.float32(alpha))

    one_minus_pt = 1.0 - pt
    if gamma == 2:
        focal = one_minus_pt * one_minus_pt          # plain VPU multiply
    else:
        focal = one_minus_pt ** int(gamma)           # integer_pow, never exp/log

    f_loss = at * focal * bce

    # Fold the (block_rows, 128) tile into the (8, 128) vreg accumulator:
    # each group of 8 consecutive rows is one native tile, so this is pure
    # VPU vector adds (no XLU, no scalar dependency chain).
    acc_ref[...] += jnp.sum(f_loss.reshape(-1, 8, LANE), axis=0)

    # Dump this core's partial-sum vreg once; the tiny final reduce and the
    # divide-by-N happen in the wrapper.
    @pl.when(i == pl.num_programs(1) - 1)
    def _finalize():
        o_ref[...] = acc_ref[...]


def weighted_focal_loss(inputs, targets, *, alpha=ALPHA, gamma=GAMMA,
                        max_block_rows=MAX_BLOCK_ROWS, num_cores=NUM_CORES):
    """Mean binary focal loss.  inputs/targets: same-shape arrays (any rank,
    any float/int dtype; targets must be 0/1-valued as in the PyTorch module)."""
    assert inputs.shape == targets.shape
    n = int(inputs.size)
    assert n > 0

    x = inputs.reshape(-1)
    t = targets.reshape(-1)

    # Choose a block size: as large as possible (amortize per-step overhead)
    # while minimizing padding and keeping every block (SUBLANE_ALIGN,128)-tiled.
    rows = pl.cdiv(n, LANE)
    rows_per_core = pl.cdiv(rows, num_cores)
    tiles_per_core = max(1, pl.cdiv(rows_per_core, max_block_rows))
    block_rows = _round_up(pl.cdiv(rows_per_core, tiles_per_core), SUBLANE_ALIGN)
    padded_rows = num_cores * tiles_per_core * block_rows
    padded_n = padded_rows * LANE

    if padded_n != n:
        # Padding with (x=+100, t=1) contributes exactly zero to the sum:
        # (1 - pt) == 0 in f32, so f_loss == 0 for every pad element.
        pad = padded_n - n
        x = jnp.concatenate([x, jnp.full((pad,), 100.0, dtype=x.dtype)])
        t = jnp.concatenate([t, jnp.ones((pad,), dtype=t.dtype)])

    x2d = x.reshape(padded_rows, LANE)
    t2d = t.reshape(padded_rows, LANE)

    kernel = functools.partial(_focal_loss_kernel,
                               alpha=float(alpha), gamma=int(gamma))

    in_map = lambda c, i: (c * tiles_per_core + i, 0)

    partials = pl.pallas_call(
        kernel,
        out_shape=jax.ShapeDtypeStruct((num_cores * 8, LANE), jnp.float32),
        grid_spec=pltpu.PrefetchScalarGridSpec(
            num_scalar_prefetch=0,
            grid=(num_cores, tiles_per_core),
            in_specs=[
                pl.BlockSpec((block_rows, LANE), in_map),
                pl.BlockSpec((block_rows, LANE), in_map),
            ],
            out_specs=pl.BlockSpec((8, LANE), lambda c, i: (c, 0)),
            scratch_shapes=[pltpu.VMEM((8, LANE), jnp.float32)],
        ),
        compiler_params=pltpu.CompilerParams(
            dimension_semantics=("parallel", "arbitrary"),
        ),
        cost_estimate=pl.CostEstimate(
            flops=15 * padded_n,
            transcendentals=2 * padded_n,
            bytes_accessed=x2d.nbytes + t2d.nbytes + num_cores * 8 * LANE * 4,
        ),
    )(x2d, t2d)

    # Tiny final reduce (num_cores*8*128 floats) + mean over the *true* N.
    return jnp.sum(partials) / jnp.float32(n)


def _reference(inputs, targets, alpha=ALPHA, gamma=GAMMA):
    x = inputs.astype(jnp.float32).reshape(-1)
    t = targets.astype(jnp.float32).reshape(-1)
    bce = jnp.maximum(x, 0.0) - x * t + jnp.log1p(jnp.exp(-jnp.abs(x)))
    at = jnp.where(t >= 0.5, 1.0 - alpha, alpha)
    pt = jnp.exp(-bce)
    return jnp.mean(at * (1.0 - pt) ** gamma * bce)


if __name__ == "__main__":
    key = jax.random.PRNGKey(0)
    k1, k2, k3, k4 = jax.random.split(key, 4)

    # Case 1: small ragged f32 problem (exercises zero-contribution padding).
    n1 = 3000
    x1 = jax.random.normal(k1, (n1,), dtype=jnp.float32) * 2.0
    t1 = jax.random.bernoulli(k2, p=0.3, shape=(n1,)).astype(jnp.float32)
    got1 = jax.block_until_ready(weighted_focal_loss(x1, t1))
    ref1 = jax.block_until_ready(_reference(x1, t1))
    assert jnp.allclose(got1, ref1, rtol=1e-5, atol=1e-6), (got1, ref1)

    # Case 2: larger problem -> multiple grid steps per core (accumulation path).
    n2 = 3 * 1024 * 128
    x2 = jax.random.normal(k3, (n2,), dtype=jnp.float32) * 2.0
    t2 = jax.random.bernoulli(k4, p=0.3, shape=(n2,)).astype(jnp.float32)
    got2 = jax.block_until_ready(weighted_focal_loss(x2, t2))
    ref2 = jax.block_until_ready(_reference(x2, t2))
    assert jnp.allclose(got2, ref2, rtol=1e-4, atol=1e-6), (got2, ref2)

    # Case 3: narrow HBM dtypes (bf16 logits, int8 targets), cast in-kernel.
    x3 = x1.astype(jnp.bfloat16)
    t3 = t1.astype(jnp.int8)
    got3 = jax.block_until_ready(weighted_focal_loss(x3, t3))
    ref3 = jax.block_until_ready(
        _reference(x3.astype(jnp.float32), t3.astype(jnp.float32)))
    assert jnp.allclose(got3, ref3, rtol=1e-5, atol=1e-6), (got3, ref3)

    print("KERNEL_OK")
</pallas_src>

<mosaic_0001>
module attributes {stable_mosaic.version = 11 : i64} {
  func.func @_focal_loss_kernel(%arg0: i32, %arg1: i32, %arg2: memref<32x128xf32, #tpu.memory_space<vmem>>, %arg3: memref<32x128xf32, #tpu.memory_space<vmem>>, %arg4: memref<8x128xf32, #tpu.memory_space<vmem>>, %arg5: memref<8x128xf32, #tpu.memory_space<vmem>>) attributes {dimension_semantics = [#tpu.dimension_semantics<parallel>, #tpu.dimension_semantics<arbitrary>], iteration_bounds = array<i64: 2, 1>, scalar_prefetch = 0 : i64, scratch_operands = 1 : i64, tpu.core_type = #tpu.core_type<tc>, window_params = [{transform_indices = @transform_0, window_bounds = array<i64: 32, 128>}, {transform_indices = @transform_1, window_bounds = array<i64: 32, 128>}, {transform_indices = @transform_2, window_bounds = array<i64: 8, 128>}]} {
    %c0_i32 = arith.constant 0 : i32
    %0 = arith.cmpi eq, %arg1, %c0_i32 : i32
    %1 = arith.extui %0 : i1 to i32
    %c0_i32_0 = arith.constant 0 : i32
    %2 = arith.cmpi ne, %1, %c0_i32_0 : i32
    scf.if %2 {
      %cst_20 = arith.constant 0.000000e+00 : f32
      %43 = vector.broadcast %cst_20 : f32 to vector<8x128xf32>
      %c0_21 = arith.constant 0 : index
      %c0_22 = arith.constant 0 : index
      %44 = vector.load %arg5[%c0_21, %c0_22] : memref<8x128xf32, #tpu.memory_space<vmem>>, vector<8x128xf32>
      tpu.vector_store %arg5[%c0_21, %c0_22], %43 {strides = array<i32>} : memref<8x128xf32, #tpu.memory_space<vmem>>, vector<8x128xf32>,
    } else {
    }
    %c0 = arith.constant 0 : index
    %c0_1 = arith.constant 0 : index
    %3 = vector.load %arg2[%c0, %c0_1] : memref<32x128xf32, #tpu.memory_space<vmem>>, vector<32x128xf32>
    %c0_2 = arith.constant 0 : index
    %c0_3 = arith.constant 0 : index
    %4 = vector.load %arg3[%c0_2, %c0_3] : memref<32x128xf32, #tpu.memory_space<vmem>>, vector<32x128xf32>
    %5 = math.absf %3 : vector<32x128xf32>
    %cst = arith.constant 0.000000e+00 : f32
    %6 = vector.broadcast %cst : f32 to vector<32x128xf32>
    %7 = arith.subf %6, %5 : vector<32x128xf32>
    %8 = math.exp %7 : vector<32x128xf32>
    %cst_4 = arith.constant 0.000000e+00 : f32
    %9 = vector.broadcast %cst_4 : f32 to vector<32x128xf32>
    %10 = arith.maximumf %3, %9 : vector<32x128xf32>
    %11 = arith.mulf %3, %4 : vector<32x128xf32>
    %12 = arith.subf %10, %11 : vector<32x128xf32>
    %13 = math.log1p %8 : vector<32x128xf32>
    %14 = arith.addf %12, %13 : vector<32x128xf32>
    %cst_5 = arith.constant 5.000000e-01 : f32
    %15 = vector.broadcast %cst_5 : f32 to vector<32x128xf32>
    %16 = arith.cmpf oge, %4, %15 : vector<32x128xf32>
    %cst_6 = arith.constant 0.000000e+00 : f32
    %17 = vector.broadcast %cst_6 : f32 to vector<32x128xf32>
    %18 = arith.cmpf olt, %3, %17 : vector<32x128xf32>
    %19 = arith.xori %16, %18 : vector<32x128xi1>
    %cst_7 = arith.constant 1.000000e+00 : f32
    %20 = vector.broadcast %cst_7 : f32 to vector<32x128xf32>
    %21 = arith.select %19, %20, %8 : vector<32x128xi1>, vector<32x128xf32>
    %cst_8 = arith.constant 1.000000e+00 : f32
    %22 = vector.broadcast %cst_8 : f32 to vector<32x128xf32>
    %23 = arith.addf %22, %8 : vector<32x128xf32>
    %24 = arith.divf %21, %23 : vector<32x128xf32>
    %cst_9 = arith.constant 5.000000e-01 : f32
    %25 = vector.broadcast %cst_9 : f32 to vector<32x128xf32>
    %26 = arith.cmpf oge, %4, %25 : vector<32x128xf32>
    %cst_10 = arith.constant 8.500000e-01 : f32
    %cst_11 = arith.constant 1.500000e-01 : f32
    %27 = vector.broadcast %cst_10 : f32 to vector<32x128xf32>
    %28 = vector.broadcast %cst_11 : f32 to vector<32x128xf32>
    %29 = arith.select %26, %27, %28 : vector<32x128xi1>, vector<32x128xf32>
    %cst_12 = arith.constant 1.000000e+00 : f32
    %30 = vector.broadcast %cst_12 : f32 to vector<32x128xf32>
    %31 = arith.subf %30, %24 : vector<32x128xf32>
    %32 = arith.mulf %31, %31 : vector<32x128xf32>
    %33 = arith.mulf %29, %32 : vector<32x128xf32>
    %34 = arith.mulf %33, %14 : vector<32x128xf32>
    %c0_13 = arith.constant 0 : index
    %c0_14 = arith.constant 0 : index
    %35 = vector.load %arg5[%c0_13, %c0_14] : memref<8x128xf32, #tpu.memory_space<vmem>>, vector<8x128xf32>
    %36 = vector.shape_cast %34 : vector<32x128xf32> to vector<4x8x128xf32>
    %cst_15 = arith.constant dense<0.000000e+00> : vector<8x128xf32>
    %37 = vector.multi_reduction <add>, %36, %cst_15 [0] : vector<4x8x128xf32> to vector<8x128xf32>
    %38 = arith.addf %35, %37 : vector<8x128xf32>
    %c0_16 = arith.constant 0 : index
    %c0_17 = arith.constant 0 : index
    %39 = vector.load %arg5[%c0_16, %c0_17] : memref<8x128xf32, #tpu.memory_space<vmem>>, vector<8x128xf32>
    tpu.vector_store %arg5[%c0_16, %c0_17], %38 {strides = array<i32>} : memref<8x128xf32, #tpu.memory_space<vmem>>, vector<8x128xf32>,
    %c0_i32_18 = arith.constant 0 : i32
    %40 = arith.cmpi eq, %arg1, %c0_i32_18 : i32
    %41 = arith.extui %40 : i1 to i32
    %c0_i32_19 = arith.constant 0 : i32
    %42 = arith.cmpi ne, %41, %c0_i32_19 : i32
    scf.if %42 {
      %c0_20 = arith.constant 0 : index
      %c0_21 = arith.constant 0 : index
      %43 = vector.load %arg5[%c0_20, %c0_21] : memref<8x128xf32, #tpu.memory_space<vmem>>, vector<8x128xf32>
      %c0_22 = arith.constant 0 : index
      %c0_23 = arith.constant 0 : index
      %44 = vector.load %arg4[%c0_22, %c0_23] : memref<8x128xf32, #tpu.memory_space<vmem>>, vector<8x128xf32>
      tpu.vector_store %arg4[%c0_22, %c0_23], %43 {strides = array<i32>} : memref<8x128xf32, #tpu.memory_space<vmem>>, vector<8x128xf32>,
    } else {
    }
    return
  }
  func.func @transform_0(%arg0: i32, %arg1: i32) -> (i32, i32) {
    %c1_i32 = arith.constant 1 : i32
    %0 = arith.muli %arg0, %c1_i32 : i32
    %1 = arith.addi %0, %arg1 : i32
    %c0_i32 = arith.constant 0 : i32
    %c0_i32_0 = arith.constant 0 : i32
    return %1, %c0_i32 : i32, i32
  }
  func.func @transform_1(%arg0: i32, %arg1: i32) -> (i32, i32) {
    %c1_i32 = arith.constant 1 : i32
    %0 = arith.muli %arg0, %c1_i32 : i32
    %1 = arith.addi %0, %arg1 : i32
    %c0_i32 = arith.constant 0 : i32
    %c0_i32_0 = arith.constant 0 : i32
    return %1, %c0_i32 : i32, i32
  }
  func.func @transform_2(%arg0: i32, %arg1: i32) -> (i32, i32) {
    %c0_i32 = arith.constant 0 : i32
    %c0_i32_0 = arith.constant 0 : i32
    return %arg0, %c0_i32 : i32, i32
  }
}

</mosaic_0001>

<bundles_post_ra>
// kernel: tpu_custom_call.1
= control target key start
LH: loop header
LB: loop body
LE: loop exit
PB: predicated region body
PF: predicated region fallthrough
CT: control target
= control target key end

     0   :  { %7 = vsyncpa [#allocation4], 0  ;;  %s1143_s0 = inlined_call_operand.hbm [shape: f32[64,128], index: 0, kind: input, shape index: {}]   ;;  %s1144_s1 = inlined_call_operand.hbm [shape: f32[64,128], index: 1, kind: input, shape index: {}]   ;;  %s1145_s2 = inlined_call_operand.hbm [shape: f32[16,128], index: 2, kind: output, shape index: {}]  }
   0x1   :  { %9 = vsyncpa [#allocation4 + $0x1], 0 }
   0x2   :  { %10 = vsyncpa [#allocation7], 0 }
   0x3   :  { %12 = vsyncpa [#allocation7 + $0x1], 0 }
   0x4   :  { %13 = vsyncpa [#allocation5], 0 }
   0x5   :  { %15 = vsyncpa [#allocation5 + $0x1], 0  ;;  %s764_s9 = smov 0   ;;  %s766_s10 = smov 0  }
   0x6   :  { %s768_s11 = smov 0   ;;  %s770_s12 = smov 0  }
   0x7   :  { %s772_s13 = smov 0   ;;  %s774_s14 = smov 0  }
   0x8 LB: > { %s481_s15 = sadd.s32 4294967295, %s741_s14   ;;  %s482_s16 = sadd.s32 4294967294, %s741_s14   ;;  %s741_s14 = sphi %s774_s14, %s21_s14   ;;  %s737_s13 = sphi %s772_s13, %s1179_s13   ;;  %s733_s12 = sphi %s770_s12, %s1178_s12   ;;  %s729_s11 = sphi %s768_s11, %s1177_s11   ;;  %s725_s10 = sphi %s766_s10, %s1176_s10   ;;  %s721_s9 = sphi %s764_s9, %s1175_s9  }
   0x9   : > { %s33_s17 = sadd.s32 1, %s737_s13  ;;  %s42_s18 = sadd.s32 1, %s729_s11 }
   0xa   : > { %p35_p0 = scmp.ge.s32.totalorder %s33_s17, 2  ;;  %p49_p1 = scmp.ne.s32.totalorder %s729_s11, %s725_s10 }
   0xb   : > { %p50_p2 = scmp.eq.s32.totalorder %s741_s14, 0  ;;  %p55_p3 = scmp.ne.s32.totalorder %s725_s10, %s721_s9 }
   0xc   : > { %s1181_s17 = smov (%p35_p0, %s33_s17), 0  ;;  %p56_p5 = scmp.eq.s32.totalorder %s481_s15, 0 }
   0xd   : > { %p805_p4 = por %p50_p2, %p49_p1  ;;  %s39_s20 = ssub.s32 %s737_s13, %s1181_s17 }
   0xe   : > { %p107_p6 = scmp.eq.s32.totalorder %s481_s15, 1  ;;  %p40_p7 = scmp.eq.s32.totalorder %s39_s20, 0 }
   0xf   : > { %p811_p8 = por %p56_p5, %p55_p3  ;;  %p113_p10 = scmp.eq.s32.totalorder %s482_s16, 1 }
  0x10   : > { %p815_p9 = por %p107_p6, %p49_p1  ;;  %p518_p13 = scmp.lt.s32.totalorder %s741_s14, 2 }
  0x11   : > { %s1149_s21 = scalar_select %p811_p8, 1, 0 }
  0x12   : > { %s1150_s22 = scalar_select %p815_p9, 1, 0 }
  0x13   : > { %s820_s23 = scalar_select %p40_p7, %s729_s11, %s42_s18  }
  0x14   : > { %p822_p11 = por %p113_p10, %p55_p3  ;;  %s829_s25 = sand.u32 1, %s729_s11  }
  0x15   : > { %s485_s26 = sshll.u32 %s829_s25, 5  ;;  %s499_s27 = sshll.u32 %s737_s13, 9 }
  0x16   : > { %s1151_s24 = scalar_select %p822_p11, 1, 0 }
  0x17   : > { %s838_s30 = scalar_lea.hbm %s1143_s0, %s499_s27  ;;  %s137_s3 = scalar_lea.vmem [#allocation3], %s485_s26 }
  0x18   : > { %s145_s4 = sshll.u32 %s137_s3, 4  ;;  %p846_p0 = pnand %p518_p13, %p805_p4  ;;  %s842_s4 = int_to_ptr.vmem [resolvable:$true] %s145_s4 }
  0x19   : > { %s134_s6 = scalar_lea.sflag [#allocation4], %s829_s25  ;;  %s595_s7 = scalar_lea.hbm %s838_s30, 512 }
  0x1a   : > { %p596_p2 = scmp.ne.s32.totalorder %s838_s30, %s595_s7  ;;  %p597_p3 = pneg %p846_p0 }
  0x1b   : > { %s600_s16 = scalar_lea.hbm %s1143_s0, 1024  ;;  %p601_p4 = scmp.lt.u32.totalorder %s838_s30, %s1143_s0 }
  0x1c   : > { %p598_p5 = pnand %p597_p3, %p596_p2  ;;  %p602_p7 = scmp.lt.u32.totalorder %s600_s16, %s595_s7 }
  0x1d   : > { %p604_p13 = scmp.lt.u32.totalorder %s595_s7, %s838_s30 }
  0x1e   : > { %p599_p6 = pneg %p598_p5  ;;  %p603_p10 = por %p602_p7, %p601_p4 }
  0x20   : > { %p605_p12 = por %p604_p13, %p603_p10 }
  0x22   : > { %p606_p1 = pnand %p605_p12, %p599_p6 }
  0x24   : > { %609 = shalt.err (!%p606_p1)
}
  0x25   : > { %s610_s20 = scalar_lea.vmem %s842_s4, 512  ;;  %s743_s28 = smov [#allocation3]  }
  0x26   : > { %p611_p2 = scmp.ne.s32.totalorder %s842_s4, %s610_s20  ;;  %s615_s29 = sshll.u32 %s743_s28, 4  ;;  %s616_s29 = int_to_ptr.vmem [resolvable:$false] %s615_s29 }
  0x27   : > { %s617_s3 = scalar_lea.vmem %s616_s29, 1024  ;;  %p618_p9 = scmp.lt.s32.totalorder %s842_s4, %s616_s29 }
  0x28   : > { %p613_p5 = pnand %p611_p2, %p597_p3  ;;  %p619_p4 = scmp.lt.s32.totalorder %s617_s3, %s610_s20 }
  0x2a   : > { %p614_p11 = pneg %p613_p5  ;;  %p620_p7 = por %p619_p4, %p618_p9 }
  0x2c   : > { %p621_p10 = pnand %p620_p7, %p614_p11 }
  0x2e   : > { %624 = shalt.err (!%p621_p10)
}
  0x2f   : > { %s744_s7 = smov 128   ;;  %s745_s8 = smov 8  }
  0x30   : > { %510 = dma.hbm_to_vmem [thread:$0]  (!%p846_p0), %s838_s30, 512, %s842_s4, %s134_s6, %s744_s7, %s744_s7, %s745_s8  }
  0x31   : > { %p175_p9 = scmp.lt.s32.totalorder %s741_s14, 3  ;;  %s888_s18 = scalar_lea.hbm %s1144_s1, %s499_s27 }
  0x32   : > { %p1153_p11 = scmp.ge.s32.totalorder %s741_s14, 1  ;;  %s159_s20 = scalar_lea.vmem [#allocation6], %s485_s26 }
  0x33   : > { %s167_s28 = sshll.u32 %s159_s20, 4  ;;  %s156_s30 = scalar_lea.sflag [#allocation7], %s829_s25  ;;  %s898_s28 = int_to_ptr.vmem [resolvable:$true] %s167_s28 }
  0x34   : > { %p892_p12 = pnand %p1153_p11, %p175_p9  ;;  %s625_s4 = scalar_lea.hbm %s888_s18, 512 }
  0x35   : > { %p626_p1 = scmp.ne.s32.totalorder %s888_s18, %s625_s4  ;;  %s630_s29 = scalar_lea.hbm %s1144_s1, 1024 }
  0x36   : > { %p631_p2 = scmp.lt.u32.totalorder %s888_s18, %s1144_s1  ;;  %p632_p5 = scmp.lt.u32.totalorder %s630_s29, %s625_s4 }
  0x37   : > { %p628_p6 = pnand %p626_p1, %p597_p3  ;;  %p634_p7 = scmp.lt.u32.totalorder %s625_s4, %s888_s18 }
  0x38   : > { %p633_p4 = por %p632_p5, %p631_p2 }
  0x39   : > { %p629_p13 = pneg %p628_p6 }
  0x3a   : > { %p635_p10 = por %p634_p7, %p633_p4 }
  0x3c   : > { %p636_p9 = pnand %p635_p10, %p629_p13 }
  0x3e   : > { %639 = shalt.err (!%p636_p9)
}
  0x3f   : > { %s640_s26 = scalar_lea.vmem %s898_s28, 512  ;;  %s746_s16 = smov [#allocation6]  }
  0x40   : > { %p641_p11 = scmp.ne.s32.totalorder %s898_s28, %s640_s26  ;;  %s645_s20 = sshll.u32 %s746_s16, 4  ;;  %s646_s20 = int_to_ptr.vmem [resolvable:$false] %s645_s20 }
  0x41   : > { %s647_s27 = scalar_lea.vmem %s646_s20, 1024  ;;  %p648_p8 = scmp.lt.s32.totalorder %s898_s28, %s646_s20 }
  0x42   : > { %p643_p1 = pnand %p641_p11, %p597_p3  ;;  %p649_p2 = scmp.lt.s32.totalorder %s647_s27, %s640_s26 }
  0x44   : > { %p644_p6 = pneg %p643_p1  ;;  %p650_p5 = por %p649_p2, %p648_p8 }
  0x46   : > { %p651_p4 = pnand %p650_p5, %p644_p6 }
  0x48   : > { %654 = shalt.err (!%p651_p4)
}
  0x49   : > { %513 = dma.hbm_to_vmem [thread:$0]  (!%p846_p0), %s888_s18, 512, %s898_s28, %s156_s30, %s744_s7, %s744_s7, %s745_s8  }
  0x4a   : > { %179 = sbr.rel (%p892_p12) target bundleno = 150 (0x96), region = 28  ;;  %s932_s4 = sand.u32 (!%p892_p12), 1, %s725_s10  }
  0x4b   : > { %s492_s6 = sshll.u32 (!%p892_p12), %s932_s4, 5  ;;  %s182_s29 = scalar_lea.sflag (!%p892_p12), [#allocation4], %s932_s4 }
  0x4c   : > { %s185_s5 = scalar_lea.vmem (!%p892_p12), [#allocation3], %s492_s6  ;;  %p1155_p8 = scmp.ne.s32.totalorder (!%p892_p12), %s1149_s21, 0 }
  0x51   : > { %708 = dma.done.wait (%p1155_p8), %s182_s29, 512  }
  0x52   : > { %710 = vsyncadd (%p1155_p8), %s182_s29, 4294966784  ;;  %s191_s25 = scalar_lea.sflag [#allocation7], %s932_s4  ;;  %s941_s7 = scalar_lea.vmem [#allocation6], %s492_s6 }
  0x53   : > { %712 = dma.done.wait (%p1155_p8), %s191_s25, 512  }
  0x54   : > { %714 = vsyncadd (%p1155_p8), %s191_s25, 4294966784  ;;  %v947_v0 = vld [vmem:[%s185_s5] sm:$0xff]  ;;  %v949_v1 = vld [vmem:[%s185_s5 + $0x8] sm:$0xff]  ;;  %s494_s21 = sshll.u32 %s932_s4, 3  ;;  %s496_s19 = sshll.u32 %s733_s12, 7 }
  0x55   : > { %v951_v2 = vld [vmem:[%s185_s5 + $0x10] sm:$0xff]  ;;  %v953_v3 = vld [vmem:[%s185_s5 + $0x18] sm:$0xff]  ;;  %v237_v4 = vand.u32 2147483647, %v947_v0  ;;  %v238_v5 = vand.u32 2147483647, %v949_v1  ;;  %s1096_s3 = scalar_lea.hbm %s1145_s2, %s496_s19 }
  0x56   : > { %v239_v6 = vand.u32 2147483647, %v951_v2  ;;  %v240_v7 = vand.u32 2147483647, %v953_v3  ;;  %v972_v24 = vld [vmem:[%s941_s7] sm:$0xff]  ;;  %v975_v25 = vld [vmem:[%s941_s7 + $0x8] sm:$0xff] }
  0x57   : > { %v241_v8 = vsub.f32 0.0, %v237_v4  ;;  %v242_v9 = vsub.f32 0.0, %v238_v5  ;;  %v253_v26 = vmax.f32 %v947_v0, 0.0  ;;  %v257_v27 = vmul.f32 %v972_v24, %v947_v0  ;;  %v986_v32 = vld [vmem:[%s941_s7 + $0x10] sm:$0xff]  ;;  %v989_v33 = vld [vmem:[%s941_s7 + $0x18] sm:$0xff]  ;;  %s219_s8 = scalar_lea.vmem [#allocation8], %s494_s21 }
  0x58   : > { %v243_v10 = vsub.f32 0.0, %v239_v6  ;;  %v244_v11 = vsub.f32 0.0, %v240_v7  ;;  %v258_v28 = vmul.f32 %v975_v25, %v949_v1  ;;  %v254_v29 = vmax.f32 %v949_v1, 0.0  ;;  %s378_s18 = sshll.u32 %s219_s8, 4  ;;  %s365_s15 = scalar_lea.sflag [#allocation5], %s932_s4  ;;  %s1091_s18 = int_to_ptr.vmem [resolvable:$true] %s378_s18 }
  0x59   : > { %v245_v12 = vmul.f32 1.442695, %v241_v8  ;;  %v247_v13 = vmul.f32 1.442695, %v242_v9  ;;  %v255_v30 = vmax.f32 %v951_v2, 0.0  ;;  %vm305_vm0 = vcmp.ge.f32.partialorder %v972_v24, 0.5 }
  0x5a   : > { %v249_v14 = vmul.f32 1.442695, %v243_v10  ;;  %v251_v15 = vmul.f32 1.442695, %v244_v11  ;;  %vm309_vm1 = vcmp.lt.f32.partialorder %v947_v0, 0.0  ;;  %vm306_vm2 = vcmp.ge.f32.partialorder %v975_v25, 0.5 }
  0x5b   : > { %571 = vpow2.f32 %v245_v12  ;;  %vm310_vm3 = vcmp.lt.f32.partialorder %v949_v1, 0.0  ;;  %v256_v36 = vmax.f32 %v953_v3, 0.0  ;;  %v259_v37 = vmul.f32 %v986_v32, %v951_v2  ;;  %vm1006_vm7 = vmxor %vm305_vm0, %vm309_vm1  ;;  %s655_s26 = scalar_lea.vmem %s1091_s18, 128  ;;  %p1172_p3 = scmp.ne.s32.totalorder %s1150_s22, 0 }
  0x5c   : > { %573 = vpow2.f32 %v247_v13  ;;  %vm307_vm4 = vcmp.ge.f32.partialorder %v986_v32, 0.5  ;;  %vm308_vm5 = vcmp.ge.f32.partialorder %v989_v33, 0.5  ;;  %vm311_vm6 = vcmp.lt.f32.partialorder %v951_v2, 0.0  ;;  %vm1017_vm9 = vmxor %vm306_vm2, %vm310_vm3  ;;  %p656_p0 = scmp.ne.s32.totalorder %s1091_s18, %s655_s26  ;;  %s748_s12 = smov [#allocation8]  }
  0x5d   : > { %575 = vpow2.f32 %v249_v14  ;;  %vm312_vm8 = vcmp.lt.f32.partialorder %v953_v3, 0.0  ;;  %v260_v47 = vmul.f32 %v989_v33, %v953_v3  ;;  %v261_v48 = vsub.f32 %v253_v26, %v257_v27  ;;  %vm1028_vm10 = vmxor %vm307_vm4, %vm311_vm6  ;;  %s659_s16 = sshll.u32 %s748_s12, 4  ;;  %s660_s16 = int_to_ptr.vmem [resolvable:$false] %s659_s16 }
  0x5e   : > { %577 = vpow2.f32 %v251_v15  ;;  %v262_v52 = vsub.f32 %v254_v29, %v258_v28  ;;  %v263_v53 = vsub.f32 %v255_v30, %v259_v37  ;;  %vm1041_vm11 = vmxor %vm308_vm5, %vm312_vm8  ;;  %p657_p12 = pnand %p656_p0, %p1172_p3  ;;  %s661_s20 = scalar_lea.vmem %s660_s16, 256 }
  0x5f   : > { %v264_v14 = vsub.f32 %v256_v36, %v260_v47  ;;  %p662_p7 = scmp.lt.s32.totalorder %s1091_s18, %s660_s16  ;;  %p663_p10 = scmp.lt.s32.totalorder %s661_s20, %s655_s26 }
  0x60   : > { %p658_p13 = pneg %p657_p12 }
  0x61   : > { %p664_p9 = por %p663_p10, %p662_p7 }
  0x63   : > { %p665_p11 = pnand %p664_p9, %p658_p13 }
  0x65   : > { %v959_v16 = vpop.eup %571 }
  0x66   : > { %v961_v17 = vpop.eup %573  ;;  %v265_v18 = vadd.f32 1.0, %v959_v16  ;;  %v268_v31 = vmul.f32 -0.5, %v959_v16  ;;  %v271_v42 = vand.u32 2147483647, %v959_v16  ;;  %v317_v56 = vsel %vm1006_vm7, 1.0, %v959_v16 }
  0x67   : > { %v964_v19 = vpop.eup %575  ;;  %v274_v20 = vadd.f32 1.0, %v961_v17  ;;  %v277_v34 = vmul.f32 -0.5, %v961_v17  ;;  %v280_v44 = vand.u32 2147483647, %v961_v17  ;;  %v318_v61 = vsel %vm1017_vm9, 1.0, %v961_v17 }
  0x68   : > { %v967_v21 = vpop.eup %577  ;;  %579 = vlog2.f32 %v265_v18  ;;  %v283_v22 = vadd.f32 1.0, %v964_v19  ;;  %v286_v35 = vmul.f32 -0.5, %v964_v19  ;;  %v269_v39 = vadd.f32 1.0, %v268_v31 }
  0x69   : > { %581 = vlog2.f32 %v274_v20  ;;  %v292_v23 = vadd.f32 1.0, %v967_v21  ;;  %v295_v38 = vmul.f32 -0.5, %v967_v21  ;;  %v278_v43 = vadd.f32 1.0, %v277_v34 }
  0x6a   : > { %583 = vlog2.f32 %v283_v22  ;;  %v287_v49 = vadd.f32 1.0, %v286_v35  ;;  %v289_v50 = vand.u32 2147483647, %v964_v19  ;;  %v270_v58 = vmul.f32 %v959_v16, %v269_v39 }
  0x6b   : > { %585 = vlog2.f32 %v292_v23  ;;  %v296_v54 = vadd.f32 1.0, %v295_v38  ;;  %v298_v59 = vand.u32 2147483647, %v967_v21  ;;  %vm1048_vm12 = vcmp.lt.f32.partialorder %v271_v42, 0.0004427343 }
  0x6c   : > { %587 = vrcp.f32 %v265_v18  ;;  %v279_v1 = vmul.f32 %v961_v17, %v278_v43  ;;  %vm1053_vm13 = vcmp.lt.f32.partialorder %v280_v44, 0.0004427343  ;;  %v288_v5 = vmul.f32 %v964_v19, %v287_v49 }
  0x6d   : > { %589 = vrcp.f32 %v274_v20  ;;  %vm1058_vm14 = vcmp.lt.f32.partialorder %v289_v50, 0.0004427343  ;;  %v319_v7 = vsel %vm1028_vm10, 1.0, %v964_v19  ;;  %v297_v10 = vmul.f32 %v967_v21, %v296_v54 }
  0x6e   : > { %591 = vrcp.f32 %v283_v22  ;;  %v320_v11 = vsel %vm1041_vm11, 1.0, %v967_v21  ;;  %vm1071_vm15 = vcmp.lt.f32.partialorder %v298_v59, 0.0004427343  ;;  %v747_v22 = vmov 0.15  }
  0x6f   : > { %593 = vrcp.f32 %v292_v23  ;;  %v333_v21 = vsel %vm305_vm0, 0.85, %v747_v22  ;;  %v334_v28 = vsel %vm306_vm2, 0.85, %v747_v22  ;;  %v335_v24 = vsel %vm307_vm4, 0.85, %v747_v22 }
  0x70   : > { %v336_v25 = vsel %vm308_vm5, 0.85, %v747_v22 }
  0x72   : > { %v580_v41 = vpop.eup %579 }
  0x73   : > { %v582_v46 = vpop.eup %581  ;;  %v267_v57 = vmul.f32 0.6931472, %v580_v41 }
  0x74   : > { %v584_v51 = vpop.eup %583  ;;  %v276_v0 = vmul.f32 0.6931472, %v582_v46 }
  0x75   : > { %v586_v62 = vpop.eup %585  ;;  %v285_v4 = vmul.f32 0.6931472, %v584_v51  ;;  %v273_v15 = vsel %vm1048_vm12, %v270_v58, %v267_v57 }
  0x76   : > { %v588_v3 = vpop.eup %587  ;;  %v294_v9 = vmul.f32 0.6931472, %v586_v62  ;;  %v282_v19 = vsel %vm1053_vm13, %v279_v1, %v276_v0  ;;  %v301_v31 = vadd.f32 %v273_v15, %v261_v48 }
  0x77   : > { %v590_v8 = vpop.eup %589  ;;  %v326_v12 = vmul.f32 %v588_v3, %v317_v56  ;;  %v291_v26 = vsel %vm1058_vm14, %v288_v5, %v285_v4  ;;  %v302_v36 = vadd.f32 %v282_v19, %v262_v52 }
  0x78   : > { %v592_v13 = vpop.eup %591  ;;  %v328_v17 = vmul.f32 %v590_v8, %v318_v61  ;;  %v300_v30 = vsel %vm1071_vm15, %v297_v10, %v294_v9  ;;  %v303_v39 = vadd.f32 %v291_v26, %v263_v53 }
  0x79   : > { %v594_v18 = vpop.eup %593  ;;  %v330_v20 = vmul.f32 %v592_v13, %v319_v7  ;;  %v337_v23 = vsub.f32 1.0, %v326_v12  ;;  %v304_v42 = vadd.f32 %v300_v30, %v264_v14 }
  0x7a   : > { %v332_v27 = vmul.f32 %v594_v18, %v320_v11  ;;  %v338_v29 = vsub.f32 1.0, %v328_v17 }
  0x7b   : > { %v339_v34 = vsub.f32 1.0, %v330_v20  ;;  %v341_v35 = vmul.f32 %v337_v23, %v337_v23 }
  0x7c   : > { %v340_v37 = vsub.f32 1.0, %v332_v27  ;;  %v342_v38 = vmul.f32 %v338_v29, %v338_v29 }
  0x7d   : > { %v343_v40 = vmul.f32 %v339_v34, %v339_v34  ;;  %v345_v41 = vmul.f32 %v341_v35, %v333_v21 }
  0x7e   : > { %v344_v43 = vmul.f32 %v340_v37, %v340_v37  ;;  %v346_v44 = vmul.f32 %v342_v38, %v334_v28 }
  0x7f   : > { %v347_v45 = vmul.f32 %v343_v40, %v335_v24  ;;  %v349_v46 = vmul.f32 %v345_v41, %v301_v31 }
  0x80   : > { %v348_v47 = vmul.f32 %v344_v43, %v336_v25  ;;  %v350_v32 = vmul.f32 %v346_v44, %v302_v36 }
  0x81   : > { %v351_v48 = vmul.f32 %v347_v45, %v303_v39 }
  0x82   : > { %v352_v49 = vmul.f32 %v348_v47, %v304_v42  ;;  %v354_v50 = vadd.f32 %v350_v32, %v349_v46 }
  0x84   : > { %v355_v33 = vadd.f32 %v354_v50, %v351_v48 }
  0x86   : > { %v356_v51 = vadd.f32 %v355_v33, %v352_v49 }
  0x88   : > { %363 = vst [vmem:[%s219_s8] sm:$0xff] %v356_v51 }
  0x89   : > { %668 = shalt.err (!%p665_p11)
}
  0x8a   : > { %s669_s27 = scalar_lea.hbm %s1096_s3, 128  ;;  %s673_s29 = scalar_lea.hbm %s1145_s2, 256 }
  0x8b   : > { %p670_p1 = scmp.ne.s32.totalorder %s1096_s3, %s669_s27  ;;  %p674_p5 = scmp.lt.u32.totalorder %s1096_s3, %s1145_s2 }
  0x8c   : > { %p675_p4 = scmp.lt.u32.totalorder %s673_s29, %s669_s27  ;;  %p677_p0 = scmp.lt.u32.totalorder %s669_s27, %s1096_s3 }
  0x8d   : > { %p671_p6 = pnand %p670_p1, %p1172_p3 }
  0x8e   : > { %p676_p8 = por %p675_p4, %p674_p5 }
  0x8f   : > { %p672_p2 = pneg %p671_p6 }
  0x90   : > { %p678_p12 = por %p677_p0, %p676_p8 }
  0x92   : > { %p679_p13 = pnand %p678_p12, %p672_p2 }
  0x94   : > { %682 = shalt.err (!%p679_p13)
}
  0x95   : > { %505 = dma.vmem_to_hbm [thread:$0]  (%p1172_p3), %s1091_s18, 128, %s1096_s3, %s365_s15  }
  0x96 PF: > { %s390_s7 = sand.u32 1, %s721_s9   ;;  %p1173_p7 = scmp.ne.s32.totalorder %s1151_s24, 0 }
  0x97   : > { %p1174_p10 = scmp.ge.s32.totalorder %s741_s14, 2  ;;  %s391_s21 = scalar_lea.sflag [#allocation5], %s390_s7 }
  0x99   : > { %p515_p9 = pnand %p1174_p10, %p1173_p7 }
  0x9b   : > { %716 = dma.done.wait (!%p515_p9), %s391_s21, 128  }
  0x9c   : > { %718 = vsyncadd (!%p515_p9), %s391_s21, 4294967168  ;;  %s21_s14 = sadd.s32 1, %s741_s14   ;;  %s1175_s9 = smov %s725_s10 }
  0x9d   : > { %p18_p11 = scmp.ge.s32.totalorder %s21_s14, 4   ;;  %s1176_s10 = smov %s729_s11 }
  0x9e   : > { %s1177_s11 = smov %s820_s23  ;;  %s1178_s12 = smov %s737_s13 }
  0x9f   : > { %s1179_s13 = smov %s1181_s17  ;;  %20 = sbr.rel (!%p18_p11) target bundleno = 8 (0x8), region = 94 }
  0xa6   :  { %396 = vsyncpa [#allocation4], 1 }
  0xa7   :  { %398 = vsyncpa [#allocation4 + $0x1], 1 }
  0xa8   :  { %399 = vsyncpa [#allocation7], 1 }
  0xa9   :  { %401 = vsyncpa [#allocation7 + $0x1], 1 }
  0xaa   :  { %402 = vsyncpa [#allocation5], 1 }
  0xab   :  { %404 = vsyncpa [#allocation5 + $0x1], 1 }

</bundles_post_ra>
